<compile_context>
chip_gen: v7x
topology: tpu7x:2x2x1
jax: 0.10.0
libtpu: 0.0.40
codegen_flags: <defaults>
</compile_context>

<pallas_src>
import jax
import jax.numpy as jnp
from jax import lax
from jax.experimental import pallas as pl
from jax.experimental.pallas import tpu as pltpu


def _round_up(x, n):
    return (x + n - 1) // n * n


# --------------------------------------------------------------------------
# Kernels
# --------------------------------------------------------------------------
def _ffn_kernel_inplace(x_ref, w1_ref, b1_ref, w2_ref, b2_ref, o_ref):
    """Output dtype is f32: accumulate straight into the (resident) output block."""
    # x_ref : (tm, D)    activation tile (resident across hidden axis)
    # w1_ref: (th, D)    layer1 weight rows, PyTorch (out, in) layout
    # b1_ref: (1, th)    layer1 bias slice (f32)
    # w2_ref: (th, D)    layer2 weight rows, transposed (in, out) layout
    # b2_ref: (1, D)     layer2 bias (f32)
    # o_ref : (tm, D) f32  output block == accumulator (same index across h)
    h_idx = pl.program_id(1)

    @pl.when(h_idx == 0)
    def _init():
        o_ref[...] = jnp.broadcast_to(b2_ref[...].astype(o_ref.dtype), o_ref.shape)

    x = x_ref[...]
    # layer1: contract x(tm,D) with W1(th,D) over D  ->  (tm, th)
    h = lax.dot_general(x, w1_ref[...],
                        dimension_numbers=(((1,), (1,)), ((), ())),
                        preferred_element_type=jnp.float32)
    h = jnp.maximum(h + b1_ref[...], 0.0)                    # bias + ReLU on VPU
    # layer2 partial: (tm, th) @ (th, D) accumulated into the output block
    o_ref[...] += jnp.dot(h.astype(w2_ref.dtype), w2_ref[...],
                          preferred_element_type=jnp.float32)


def _ffn_kernel_scratch(x_ref, w1_ref, b1_ref, w2_ref, b2_ref, o_ref, acc_ref):
    """Non-f32 output dtype: accumulate in an f32 VMEM scratch, cast on last step."""
    h_idx = pl.program_id(1)

    @pl.when(h_idx == 0)
    def _init():
        acc_ref[...] = jnp.broadcast_to(b2_ref[...].astype(jnp.float32), acc_ref.shape)

    x = x_ref[...]
    h = lax.dot_general(x, w1_ref[...],
                        dimension_numbers=(((1,), (1,)), ((), ())),
                        preferred_element_type=jnp.float32)
    h = jnp.maximum(h + b1_ref[...], 0.0)
    acc_ref[...] += jnp.dot(h.astype(w2_ref.dtype), w2_ref[...],
                            preferred_element_type=jnp.float32)

    @pl.when(h_idx == pl.num_programs(1) - 1)
    def _finalize():
        o_ref[...] = acc_ref[...].astype(o_ref.dtype)


# --------------------------------------------------------------------------
# Generation-aware tuning helpers
# --------------------------------------------------------------------------
def _tpu_info():
    """(vmem_capacity_bytes, num_tensorcores) with conservative fallbacks."""
    vmem_cap = 64 << 20     # safe on every generation (v7x per-TC VMEM)
    num_tc = 2
    try:
        info = pltpu.get_tpu_info()
        cap = getattr(info, "vmem_capacity_bytes", None)
        if cap:
            vmem_cap = int(cap)
        for name in ("num_tensorcores", "tensorcores_per_chip",
                     "num_cores", "cores_per_chip"):
            v = getattr(info, name, None)
            if v:
                num_tc = int(v)
                break
        else:
            # heuristic: 64 MiB/TC chips (v7x) have 2 TCs; 128 MiB chips have 1
            num_tc = 2 if vmem_cap <= (64 << 20) else 1
    except Exception:
        pass
    return vmem_cap, num_tc


def _select_tiles(m, d_pad, itemsize, out_itemsize, use_scratch,
                  vmem_cap, num_tc, block_m=None, block_h=None):
    """Pick (block_m, block_h) sized to the chip's VMEM, with explicit backoff."""
    budget = max(min(int(vmem_cap * 0.85), vmem_cap - (8 << 20)), 16 << 20)
    big_vmem = vmem_cap >= (96 << 20)      # v5e / v6e (128 MiB) vs v7x (64 MiB)

    if block_h is None:
        h_target = 1024 if big_vmem else 512
        block_h = 128
        for c in (1024, 512, 256, 128):
            if c <= h_target and d_pad % c == 0:
                block_h = c
                break
        block_h = min(block_h, d_pad)
    assert d_pad % block_h == 0, "block_h must divide padded dim_ff"

    if block_m is None:
        # Arithmetic intensity ~ block_m flop/byte (bf16): want >= knee
        # (~650 v6e, ~310/TC v7x but weights shared across 2 TCs, ~240 v5e).
        block_m = 1024 if big_vmem else 512

    def residency(bm, bh):
        return (2 * bm * d_pad * itemsize          # x tiles (double-buffered)
                + 2 * bh * d_pad * itemsize        # W1 row slices
                + 2 * bh * d_pad * itemsize        # W2^T row slices
                + 2 * bm * d_pad * out_itemsize    # output tiles
                + (bm * d_pad * 4 if use_scratch else 0)
                + 4 * d_pad * 4)                   # biases

    # Backoff: shrink block_h first (cheapest), then block_m.
    while (residency(block_m, block_h) > budget and block_h > 128
           and (block_h // 2) % 128 == 0 and d_pad % (block_h // 2) == 0):
        block_h //= 2
    while residency(block_m, block_h) > budget and block_m > 64:
        block_m //= 2

    # Clamp to problem size; keep MXU/sublane-friendly alignment.
    if block_m >= m:
        block_m = m
    else:
        if block_m >= 256:
            block_m = (block_m // 256) * 256
        block_m = max((block_m // 8) * 8, 8)

    # Multi-TensorCore: parallel M axis must have >= num_tc blocks.
    if num_tc > 1 and pl.cdiv(m, block_m) < num_tc and m >= num_tc * 8:
        block_m = max(8, _round_up(pl.cdiv(m, num_tc), 8))

    return block_m, block_h, residency(block_m, block_h), budget


# --------------------------------------------------------------------------
# Parameter preparation (one-time, out of the per-call hot path)
# --------------------------------------------------------------------------
def prepare_ffn_params(w1, b1, w2, b2, *, compute_dtype=jnp.bfloat16):
    """w1, w2 in PyTorch nn.Linear layout (out_features, in_features).

    Pads to a multiple of 128 and stores:
      * W1 in (out, in) layout  -> contiguous (block_h, D) row slices
      * W2 transposed (in, out) -> contiguous (block_h, D) row slices
    """
    d = w1.shape[0]
    d_pad = _round_up(d, 128)
    pad = d_pad - d

    w1p = w1.astype(compute_dtype)          # (hidden_out, D_in)
    w2tp = w2.T.astype(compute_dtype)       # (hidden_in, D_out)
    b1p, b2p = b1, b2
    if pad:
        w1p = jnp.pad(w1p, ((0, pad), (0, pad)))
        w2tp = jnp.pad(w2tp, ((0, pad), (0, pad)))
        b1p = jnp.pad(b1, (0, pad))
        b2p = jnp.pad(b2, (0, pad))

    return {
        "w1": w1p,
        "w2t": w2tp,
        "b1": b1p.reshape(1, d_pad).astype(jnp.float32),
        "b2": b2p.reshape(1, d_pad).astype(jnp.float32),
        "d": d,
        "d_pad": d_pad,
        "compute_dtype": compute_dtype,
    }


# --------------------------------------------------------------------------
# Forward pass
# --------------------------------------------------------------------------
def feed_forward_block_prepared(x, params, *, block_m=None, block_h=None):
    """x: (batch, seq, dim_ff); params from prepare_ffn_params."""
    batch, seq, d = x.shape
    assert d == params["d"], "dim mismatch with prepared params"
    d_pad = params["d_pad"]
    cdtype = params["compute_dtype"]
    m = batch * seq
    out_dtype = x.dtype

    x2d = x.reshape(m, d).astype(cdtype)
    if d_pad != d:
        x2d = jnp.pad(x2d, ((0, 0), (0, d_pad - d)))

    use_scratch = jnp.dtype(out_dtype) != jnp.dtype(jnp.float32)
    itemsize = jnp.dtype(cdtype).itemsize
    out_itemsize = jnp.dtype(out_dtype).itemsize

    vmem_cap, num_tc = _tpu_info()
    bm, bh, res, budget = _select_tiles(m, d_pad, itemsize, out_itemsize,
                                        use_scratch, vmem_cap, num_tc,
                                        block_m=block_m, block_h=block_h)

    grid_m = pl.cdiv(m, bm)
    grid = (grid_m, d_pad // bh)

    # VMEM limit: sized to actual residency, headroom kept below physical VMEM
    # (especially on v7x's 64 MiB/TC).
    vmem_limit = int(res * 1.4) + (4 << 20)
    vmem_limit = max(vmem_limit, 24 << 20)
    vmem_limit = min(vmem_limit, budget + (4 << 20), vmem_cap - (4 << 20))
    vmem_limit = max(vmem_limit, 16 << 20)

    cost = pl.CostEstimate(
        flops=4 * m * d_pad * d_pad,              # two dense matmuls
        transcendentals=0,
        bytes_accessed=int(m * d_pad * (itemsize + out_itemsize)     # x in, out
                           + grid_m * 2 * d_pad * d_pad * itemsize   # W re-streamed per M tile
                           + 2 * d_pad * 4),                         # biases
    )

    if use_scratch:
        kernel = _ffn_kernel_scratch
        scratch = (pltpu.VMEM((bm, d_pad), jnp.float32),)
    else:
        kernel = _ffn_kernel_inplace               # output block is the accumulator
        scratch = ()

    out2d = pl.pallas_call(
        kernel,
        out_shape=jax.ShapeDtypeStruct((m, d_pad), out_dtype),
        grid_spec=pltpu.PrefetchScalarGridSpec(
            num_scalar_prefetch=0,
            grid=grid,
            in_specs=[
                pl.BlockSpec((bm, d_pad), lambda i, h: (i, 0)),   # x tile
                pl.BlockSpec((bh, d_pad), lambda i, h: (h, 0)),   # W1 rows (out,in)
                pl.BlockSpec((1, bh), lambda i, h: (0, h)),       # b1 slice
                pl.BlockSpec((bh, d_pad), lambda i, h: (h, 0)),   # W2^T rows (in,out)
                pl.BlockSpec((1, d_pad), lambda i, h: (0, 0)),    # b2
            ],
            out_specs=pl.BlockSpec((bm, d_pad), lambda i, h: (i, 0)),
            scratch_shapes=scratch,
        ),
        compiler_params=pltpu.CompilerParams(
            dimension_semantics=("parallel", "arbitrary"),
            vmem_limit_bytes=int(vmem_limit),
        ),
        cost_estimate=cost,
    )(x2d, params["w1"], params["b1"], params["w2t"], params["b2"])

    if d_pad != d:
        out2d = out2d[:, :d]
    return out2d.reshape(batch, seq, d)


def feed_forward_block(x, w1, b1, w2, b2, *, compute_dtype=jnp.bfloat16,
                       block_m=None, block_h=None):
    """Convenience wrapper: w1/w2 in PyTorch (out_features, in_features) layout.

    NOTE: for production use, call prepare_ffn_params once at init and reuse
    the prepared (padded / laid-out) params across forward calls."""
    params = prepare_ffn_params(w1, b1, w2, b2, compute_dtype=compute_dtype)
    return feed_forward_block_prepared(x, params, block_m=block_m, block_h=block_h)


def reference_ffn(x, w1, b1, w2, b2):
    # PyTorch layout: y = x @ W^T + b
    h = jnp.maximum(jnp.einsum("bsd,hd->bsh", x, w1) + b1, 0.0)
    return jnp.einsum("bsh,oh->bso", h, w2) + b2


if __name__ == "__main__":
    batch, seq, dim_ff = 2, 8, 32

    key = jax.random.PRNGKey(0)
    k_x, k_w1, k_b1, k_w2, k_b2 = jax.random.split(key, 5)

    x = jax.random.normal(k_x, (batch, seq, dim_ff), dtype=jnp.float32)

    # nn.Linear default init: U(-1/sqrt(fan_in), 1/sqrt(fan_in)),
    # weight stored as (out_features, in_features).
    bound = 1.0 / (dim_ff ** 0.5)
    w1 = jax.random.uniform(k_w1, (dim_ff, dim_ff), jnp.float32, -bound, bound)
    b1 = jax.random.uniform(k_b1, (dim_ff,), jnp.float32, -bound, bound)
    w2 = jax.random.uniform(k_w2, (dim_ff, dim_ff), jnp.float32, -bound, bound)
    b2 = jax.random.uniform(k_b2, (dim_ff,), jnp.float32, -bound, bound)

    ref = reference_ffn(x, w1, b1, w2, b2)

    # Default path: bf16 compute on the MXU, f32 accumulation/output.
    out_bf16 = jax.block_until_ready(feed_forward_block(x, w1, b1, w2, b2))
    assert out_bf16.shape == (batch, seq, dim_ff)
    assert jnp.allclose(out_bf16, ref, atol=5e-2, rtol=5e-2), "bf16 path mismatch"

    # f32 compute path: must match the reference tightly.
    out_f32 = jax.block_until_ready(
        feed_forward_block(x, w1, b1, w2, b2, compute_dtype=jnp.float32))
    assert out_f32.shape == (batch, seq, dim_ff)
    assert jnp.allclose(out_f32, ref, atol=1e-5, rtol=1e-5), "f32 path mismatch"

    print("KERNEL_OK")
</pallas_src>

<mosaic_0001>
module attributes {stable_mosaic.version = 11 : i64} {
  func.func @_ffn_kernel_inplace(%arg0: i32, %arg1: i32, %arg2: memref<8x128xbf16, #tpu.memory_space<vmem>>, %arg3: memref<128x128xbf16, #tpu.memory_space<vmem>>, %arg4: memref<1x128xf32, #tpu.memory_space<vmem>>, %arg5: memref<128x128xbf16, #tpu.memory_space<vmem>>, %arg6: memref<1x128xf32, #tpu.memory_space<vmem>>, %arg7: memref<8x128xf32, #tpu.memory_space<vmem>>) attributes {dimension_semantics = [#tpu.dimension_semantics<parallel>, #tpu.dimension_semantics<arbitrary>], iteration_bounds = array<i64: 2, 1>, scalar_prefetch = 0 : i64, scratch_operands = 0 : i64, tpu.core_type = #tpu.core_type<tc>, window_params = [{transform_indices = @transform_0, window_bounds = array<i64: 8, 128>}, {transform_indices = @transform_1, window_bounds = array<i64: 128, 128>}, {transform_indices = @transform_2, window_bounds = array<i64: 1, 128>}, {transform_indices = @transform_3, window_bounds = array<i64: 128, 128>}, {pipeline_mode = #tpu.pipeline_mode<synchronous>, transform_indices = @transform_4, window_bounds = array<i64: 1, 128>}, {transform_indices = @transform_5, window_bounds = array<i64: 8, 128>}]} {
    %c0_i32 = arith.constant 0 : i32
    %0 = arith.cmpi eq, %arg1, %c0_i32 : i32
    %1 = arith.extui %0 : i1 to i32
    %c0_i32_0 = arith.constant 0 : i32
    %2 = arith.cmpi ne, %1, %c0_i32_0 : i32
    scf.if %2 {
      %c0_14 = arith.constant 0 : index
      %c0_15 = arith.constant 0 : index
      %17 = vector.load %arg6[%c0_14, %c0_15] : memref<1x128xf32, #tpu.memory_space<vmem>>, vector<1x128xf32>
      %18 = vector.shape_cast %17 : vector<1x128xf32> to vector<1x128xf32>
      %19 = vector.broadcast %18 : vector<1x128xf32> to vector<8x128xf32>
      %c0_16 = arith.constant 0 : index
      %c0_17 = arith.constant 0 : index
      %20 = vector.load %arg7[%c0_16, %c0_17] : memref<8x128xf32, #tpu.memory_space<vmem>>, vector<8x128xf32>
      tpu.vector_store %arg7[%c0_16, %c0_17], %19 {strides = array<i32>} : memref<8x128xf32, #tpu.memory_space<vmem>>, vector<8x128xf32>,
    } else {
    }
    %c0 = arith.constant 0 : index
    %c0_1 = arith.constant 0 : index
    %3 = vector.load %arg2[%c0, %c0_1] : memref<8x128xbf16, #tpu.memory_space<vmem>>, vector<8x128xbf16>
    %c0_2 = arith.constant 0 : index
    %c0_3 = arith.constant 0 : index
    %4 = vector.load %arg3[%c0_2, %c0_3] : memref<128x128xbf16, #tpu.memory_space<vmem>>, vector<128x128xbf16>
    %cst = arith.constant dense<0.000000e+00> : vector<8x128xf32>
    %5 = tpu.matmul %3, %4, %cst {dimension_numbers = #tpu.dot_dimension_numbers<[1], [1], [0], [0], [0, 0, 1, 0], [], []>} : vector<8x128xbf16>, vector<128x128xbf16>, vector<8x128xf32> -> vector<8x128xf32>
    %c0_4 = arith.constant 0 : index
    %c0_5 = arith.constant 0 : index
    %6 = vector.load %arg4[%c0_4, %c0_5] : memref<1x128xf32, #tpu.memory_space<vmem>>, vector<1x128xf32>
    %7 = vector.broadcast %6 : vector<1x128xf32> to vector<8x128xf32>
    %8 = arith.addf %5, %7 : vector<8x128xf32>
    %cst_6 = arith.constant 0.000000e+00 : f32
    %9 = vector.broadcast %cst_6 : f32 to vector<8x128xf32>
    %10 = arith.maximumf %8, %9 : vector<8x128xf32>
    %c0_7 = arith.constant 0 : index
    %c0_8 = arith.constant 0 : index
    %11 = vector.load %arg7[%c0_7, %c0_8] : memref<8x128xf32, #tpu.memory_space<vmem>>, vector<8x128xf32>
    %12 = arith.truncf %10 : vector<8x128xf32> to vector<8x128xbf16>
    %c0_9 = arith.constant 0 : index
    %c0_10 = arith.constant 0 : index
    %13 = vector.load %arg5[%c0_9, %c0_10] : memref<128x128xbf16, #tpu.memory_space<vmem>>, vector<128x128xbf16>
    %cst_11 = arith.constant dense<0.000000e+00> : vector<8x128xf32>
    %14 = tpu.matmul %12, %13, %cst_11 {dimension_numbers = #tpu.dot_dimension_numbers<[1], [0], [0], [1], [0, 0, 1, 1], [], []>} : vector<8x128xbf16>, vector<128x128xbf16>, vector<8x128xf32> -> vector<8x128xf32>
    %15 = arith.addf %11, %14 : vector<8x128xf32>
    %c0_12 = arith.constant 0 : index
    %c0_13 = arith.constant 0 : index
    %16 = vector.load %arg7[%c0_12, %c0_13] : memref<8x128xf32, #tpu.memory_space<vmem>>, vector<8x128xf32>
    tpu.vector_store %arg7[%c0_12, %c0_13], %15 {strides = array<i32>} : memref<8x128xf32, #tpu.memory_space<vmem>>, vector<8x128xf32>,
    return
  }
  func.func @transform_0(%arg0: i32, %arg1: i32) -> (i32, i32) {
    %c0_i32 = arith.constant 0 : i32
    %c0_i32_0 = arith.constant 0 : i32
    return %arg0, %c0_i32 : i32, i32
  }
  func.func @transform_1(%arg0: i32, %arg1: i32) -> (i32, i32) {
    %c0_i32 = arith.constant 0 : i32
    %c0_i32_0 = arith.constant 0 : i32
    return %arg1, %c0_i32 : i32, i32
  }
  func.func @transform_2(%arg0: i32, %arg1: i32) -> (i32, i32) {
    %c0_i32 = arith.constant 0 : i32
    %c0_i32_0 = arith.constant 0 : i32
    return %c0_i32, %arg1 : i32, i32
  }
  func.func @transform_3(%arg0: i32, %arg1: i32) -> (i32, i32) {
    %c0_i32 = arith.constant 0 : i32
    %c0_i32_0 = arith.constant 0 : i32
    return %arg1, %c0_i32 : i32, i32
  }
  func.func @transform_4(%arg0: i32, %arg1: i32) -> (i32, i32) {
    %c0_i32 = arith.constant 0 : i32
    %c0_i32_0 = arith.constant 0 : i32
    %c0_i32_1 = arith.constant 0 : i32
    return %c0_i32, %c0_i32_0 : i32, i32
  }
  func.func @transform_5(%arg0: i32, %arg1: i32) -> (i32, i32) {
    %c0_i32 = arith.constant 0 : i32
    %c0_i32_0 = arith.constant 0 : i32
    return %arg0, %c0_i32 : i32, i32
  }
}

</mosaic_0001>

<bundles_post_ra>
// kernel: tpu_custom_call.1
= control target key start
LH: loop header
LB: loop body
LE: loop exit
PB: predicated region body
PF: predicated region fallthrough
CT: control target
= control target key end

     0   :  { %10 = vsyncpa [#allocation3], 0  ;;  %s1343_s0 = inlined_call_operand.hbm [shape: bf16[16,128], index: 0, kind: input, shape index: {}]   ;;  %s1344_s1 = inlined_call_operand.hbm [shape: bf16[128,128], index: 1, kind: input, shape index: {}]   ;;  %s1345_s2 = inlined_call_operand.vmem [shape: f32[1,128], index: 2, kind: input, shape index: {}]   ;;  %s1346_s3 = inlined_call_operand.hbm [shape: bf16[128,128], index: 3, kind: input, shape index: {}]   ;;  %s1347_s4 = inlined_call_operand.vmem [shape: f32[1,128], index: 4, kind: input, shape index: {}]   ;;  %s1348_s5 = inlined_call_operand.hbm [shape: f32[16,128], index: 5, kind: output, shape index: {}]  }
   0x1   :  { %12 = vsyncpa [#allocation3 + $0x1], 0 }
   0x2   :  { %13 = vsyncpa [#allocation6], 0 }
   0x3   :  { %14 = vsyncpa [#allocation4], 0 }
   0x4   :  { %16 = vsyncpa [#allocation4 + $0x1], 0  ;;  %s1083_s18 = smov 0   ;;  %s1085_s19 = smov 0  }
   0x5   :  { %s1087_s20 = smov 0   ;;  %s1089_s21 = smov 0  }
   0x6   :  { %s1091_s22 = smov 0   ;;  %s1093_s23 = smov 0  }
   0x7 LB: > { %s674_s24 = sadd.s32 4294967295, %s1043_s23   ;;  %s675_s25 = sadd.s32 4294967294, %s1043_s23   ;;  %s1043_s23 = sphi %s1093_s23, %s22_s23   ;;  %s1039_s22 = sphi %s1091_s22, %s1370_s22   ;;  %s1035_s21 = sphi %s1089_s21, %s1369_s21   ;;  %s1031_s20 = sphi %s1087_s20, %s1368_s20   ;;  %s1027_s19 = sphi %s1085_s19, %s1367_s19   ;;  %s1023_s18 = sphi %s1083_s18, %s1366_s18  }
   0x8   : > { %p54_p0 = scmp.ne.s32.totalorder %s1027_s19, %s1023_s18  ;;  %p1117_p1 = scmp.eq.s32.totalorder %s674_s24, 0 }
   0x9   : > { %p1121_p2 = scmp.eq.s32.totalorder %s674_s24, 1  ;;  %p183_p3 = scmp.eq.s32.totalorder %s675_s25, 1 }
   0xa   : > { %s1353_s26 = scalar_select %p1117_p1, 1, 0 }
   0xb   : > { %p1127_p4 = por %p1117_p1, %p54_p0  ;;  %p676_p5 = scmp.ge.s32.totalorder %s1043_s23, 1 }
   0xc   : > { %p1132_p6 = por %p183_p3, %p54_p0  ;;  %p190_p7 = scmp.lt.s32.totalorder %s1043_s23, 3 }
   0xd   : > { %s1355_s28 = scalar_select %p1127_p4, 1, 0 }
   0xe   : > { %s1356_s29 = scalar_select %p1132_p6, 1, 0 }
   0xf   : > { %p1137_p8 = pnand %p676_p5, %p190_p7  ;;  %s1045_s6 = smov [#allocation5]  }
  0x10   : > { %s205_s7 = sshll.u32 %s1045_s6, 4  ;;  %s1046_s9 = smov [#allocation7]   ;;  %s1141_s7 = int_to_ptr.vmem [resolvable:$true] %s205_s7 }
  0x11   : > { %p780_p9 = pneg %p1137_p8  ;;  %s227_s10 = sshll.u32 %s1046_s9, 4  ;;  %s1152_s10 = int_to_ptr.vmem [resolvable:$true] %s227_s10 }
  0x12   : > { %s871_s13 = scalar_lea.hbm %s1344_s1, 1024 }
  0x13   : > { %p1148_p11 = pnand %p780_p9, %p1117_p1  ;;  %p872_p12 = scmp.ne.s32.totalorder %s1344_s1, %s871_s13 }
  0x14   : > { %p878_p5 = scmp.lt.u32.totalorder %s871_s13, %s1344_s1 }
  0x15   : > { %p873_p13 = pneg %p1148_p11 }
  0x17   : > { %p874_p0 = pnand %p873_p13, %p872_p12 }
  0x19   : > { %p875_p3 = pneg %p874_p0 }
  0x1b   : > { %p880_p7 = pnand %p878_p5, %p875_p3 }
  0x1d   : > { %883 = shalt.err (!%p880_p7)
}
  0x1e   : > { %s884_s24 = scalar_lea.vmem %s1141_s7, 1024  ;;  %p892_p1 = scmp.lt.s32.totalorder %s1141_s7, %s1141_s7 }
  0x1f   : > { %p885_p9 = scmp.ne.s32.totalorder %s1141_s7, %s884_s24  ;;  %p893_p12 = scmp.lt.s32.totalorder %s884_s24, %s884_s24 }
  0x21   : > { %p887_p10 = pnand %p885_p9, %p873_p13  ;;  %p894_p0 = por %p893_p12, %p892_p1 }
  0x23   : > { %p888_p6 = pneg %p887_p10 }
  0x25   : > { %p895_p4 = pnand %p894_p0, %p888_p6 }
  0x27   : > { %898 = shalt.err (!%p895_p4)
}
  0x28   : > { %s1047_s25 = smov 64   ;;  %s1048_s6 = smov 4  }
  0x29   : > { %783 = dma.hbm_to_vmem [thread:$0]  (!%p1148_p11), %s1344_s1, 1024, %s1141_s7, [#allocation6], %s1047_s25, %s1047_s25, %s1048_s6  }
  0x2a   : > { %s899_s14 = scalar_lea.hbm %s1346_s3, 1024 }
  0x2b   : > { %p900_p1 = scmp.ne.s32.totalorder %s1346_s3, %s899_s14  ;;  %p906_p10 = scmp.lt.u32.totalorder %s899_s14, %s1346_s3 }
  0x2d   : > { %p902_p4 = pnand %p900_p1, %p873_p13 }
  0x2f   : > { %p903_p6 = pneg %p902_p4 }
  0x31   : > { %p908_p3 = pnand %p906_p10, %p903_p6 }
  0x33   : > { %911 = shalt.err (!%p908_p3)
}
  0x34   : > { %s912_s7 = scalar_lea.vmem %s1152_s10, 1024  ;;  %p920_p12 = scmp.lt.s32.totalorder %s1152_s10, %s1152_s10 }
  0x35   : > { %p913_p5 = scmp.ne.s32.totalorder %s1152_s10, %s912_s7  ;;  %p921_p0 = scmp.lt.s32.totalorder %s912_s7, %s912_s7 }
  0x37   : > { %p915_p7 = pnand %p913_p5, %p873_p13  ;;  %p922_p1 = por %p921_p0, %p920_p12 }
  0x39   : > { %p916_p9 = pneg %p915_p7 }
  0x3b   : > { %p923_p4 = pnand %p922_p1, %p916_p9 }
  0x3d   : > { %926 = shalt.err (!%p923_p4)
}
  0x3e   : > { %786 = dma.hbm_to_vmem [thread:$0]  (!%p1148_p11), %s1346_s3, 1024, %s1152_s10, [#allocation6], %s1047_s25, %s1047_s25, %s1048_s6  }
  0x3f   : > { %s34_s12 = sadd.s32 1, %s1039_s22  ;;  %s41_s13 = sadd.s32 1, %s1031_s20 }
  0x40   : > { %p36_p13 = scmp.ge.s32.totalorder %s34_s12, 2  ;;  %p48_p6 = scmp.ne.s32.totalorder %s1031_s20, %s1027_s19 }
  0x41   : > { %p49_p10 = scmp.eq.s32.totalorder %s1043_s23, 0  ;;  %p797_p3 = scmp.lt.s32.totalorder %s1043_s23, 2 }
  0x42   : > { %s1372_s12 = smov (%p36_p13, %s34_s12), 0  ;;  %p1216_p7 = por %p1121_p2, %p48_p6 }
  0x43   : > { %p50_p5 = por %p49_p10, %p48_p6  ;;  %s38_s14 = ssub.s32 %s1039_s22, %s1372_s12 }
  0x44   : > { %s1359_s8 = scalar_select %p1216_p7, 1, 0 }
  0x45   : > { %s244_s15 = sand.u32 1, %s1031_s20   ;;  %p39_p9 = scmp.eq.s32.totalorder %s38_s14, 0 }
  0x46   : > { %s681_s10 = sshll.u32 %s244_s15, 2  ;;  %s682_s25 = sshll.u32 %s1039_s22, 6 }
  0x47   : > { %s1225_s6 = scalar_select %p39_p9, %s1031_s20, %s41_s13  }
  0x48   : > { %s1230_s24 = scalar_lea.hbm %s1343_s0, %s682_s25  ;;  %s248_s27 = scalar_lea.vmem [#allocation2], %s681_s10 }
  0x49   : > { %s255_s7 = sshll.u32 %s248_s27, 4  ;;  %p1234_p2 = pnand %p797_p3, %p50_p5  ;;  %s1238_s7 = int_to_ptr.vmem [resolvable:$true] %s255_s7 }
  0x4a   : > { %s245_s11 = scalar_lea.sflag [#allocation3], %s244_s15  ;;  %s927_s13 = scalar_lea.hbm %s1230_s24, 64 }
  0x4b   : > { %p928_p11 = scmp.ne.s32.totalorder %s1230_s24, %s927_s13  ;;  %p929_p12 = pneg %p1234_p2 }
  0x4c   : > { %s932_s25 = scalar_lea.hbm %s1343_s0, 128  ;;  %p933_p4 = scmp.lt.u32.totalorder %s1230_s24, %s1343_s0 }
  0x4d   : > { %p930_p0 = pnand %p929_p12, %p928_p11  ;;  %p934_p13 = scmp.lt.u32.totalorder %s932_s25, %s927_s13 }
  0x4e   : > { %p936_p10 = scmp.lt.u32.totalorder %s927_s13, %s1230_s24 }
  0x4f   : > { %p931_p1 = pneg %p930_p0  ;;  %p935_p6 = por %p934_p13, %p933_p4 }
  0x51   : > { %p937_p3 = por %p936_p10, %p935_p6 }
  0x53   : > { %p938_p5 = pnand %p937_p3, %p931_p1 }
  0x55   : > { %941 = shalt.err (!%p938_p5)
}
  0x56   : > { %s942_s15 = scalar_lea.vmem %s1238_s7, 64  ;;  %s1049_s27 = smov [#allocation2]  }
  0x57   : > { %p943_p9 = scmp.ne.s32.totalorder %s1238_s7, %s942_s15  ;;  %s947_s14 = sshll.u32 %s1049_s27, 4  ;;  %s948_s14 = int_to_ptr.vmem [resolvable:$false] %s947_s14 }
  0x58   : > { %s949_s10 = scalar_lea.vmem %s948_s14, 128  ;;  %p950_p7 = scmp.lt.s32.totalorder %s1238_s7, %s948_s14 }
  0x59   : > { %p945_p11 = pnand %p943_p9, %p929_p12  ;;  %p951_p4 = scmp.lt.s32.totalorder %s949_s10, %s942_s15 }
  0x5b   : > { %p946_p0 = pneg %p945_p11  ;;  %p952_p13 = por %p951_p4, %p950_p7 }
  0x5d   : > { %p953_p6 = pnand %p952_p13, %p946_p0 }
  0x5f   : > { %956 = shalt.err (!%p953_p6)
}
  0x60   : > { %790 = dma.hbm_to_vmem [thread:$0]  (!%p1234_p2), %s1230_s24, 64, %s1238_s7, %s245_s11  }
  0x61   : > { %264 = sbr.rel (%p1137_p8) target bundleno = 620 (0x26c), region = 40  ;;  %s1268_s13 = sand.u32 (!%p1137_p8), 1, %s1027_s19  }
  0x62   : > { %s684_s25 = sshll.u32 (!%p1137_p8), %s1268_s13, 2  ;;  %s267_s16 = scalar_lea.sflag (!%p1137_p8), [#allocation3], %s1268_s13 }
  0x63   : > { %s1272_s17 = scalar_lea.vmem (!%p1137_p8), [#allocation2], %s684_s25  ;;  %p1361_p7 = scmp.ne.s32.totalorder (!%p1137_p8), %s1355_s28, 0 }
  0x68   : > { %1010 = dma.done.wait (%p1361_p7), %s267_s16, 64  }
  0x69   : > { %1012 = vsyncadd (%p1361_p7), %s267_s16, 4294967232  ;;  %p1362_p2 = scmp.ne.s32.totalorder %s1353_s26, 0 }
  0x6b   : > { %1014 = dma.done.wait (%p1362_p2), [#allocation6], 2048  }
  0x6c   : > { %1016 = vsyncadd (%p1362_p2), [#allocation6], 4294965248  ;;  %v1050_v0 = vmov 0.0   ;;  %vm1051_vm0 = vmmov 0   ;;  %v855_v1 = vld [vmem:[#allocation5] sm:$0xff]   ;;  %v856_v2 = vld [vmem:[#allocation5 + $0x8] sm:$0xff]  }
  0x6d   : > { %728 = vmatprep.subr.bf16.mxu0 %v1050_v0  ;;  %744 = vmatprep.mubr.msk.bf16.mxu0 %vm1051_vm0, %v1050_v0  ;;  %v863_v3 = vld [vmem:[#allocation7] sm:$0xff]   ;;  %v864_v4 = vld [vmem:[#allocation7 + $0x8] sm:$0xff]   ;;  %v857_v5 = vld [vmem:[#allocation5 + $0x10] sm:$0xff]   ;;  %s687_s30 = sshll.u32 %s1268_s13, 3  ;;  %s707_s9 = sshll.u32 %s1035_s21, 7 }
  0x6e   : > { %748 = vmatprep.subr.bf16.mxu1 %v1050_v0  ;;  %764 = vmatprep.mubr.msk.bf16.mxu1 %vm1051_vm0, %v1050_v0  ;;  %v865_v6 = vld [vmem:[#allocation7 + $0x10] sm:$0xff]   ;;  %v866_v7 = vld [vmem:[#allocation7 + $0x18] sm:$0xff]   ;;  %v867_v9 = vld [vmem:[#allocation7 + $0x20] sm:$0xff]   ;;  %s307_s11 = scalar_lea.vmem [#allocation8], %s687_s30  ;;  %s1294_s10 = scalar_lea.hbm %s1348_s5, %s707_s9 }
  0x6f   : > { %729 = vmatpush3.bf16.xpose.msra.mxu0 %v855_v1  ;;  %749 = vmatpush3.bf16.msra.mxu1 %v863_v3  ;;  %v858_v8 = vld [vmem:[#allocation5 + $0x18] sm:$0xff]   ;;  %v868_v10 = vld [vmem:[#allocation7 + $0x28] sm:$0xff]   ;;  %v859_v11 = vld [vmem:[#allocation5 + $0x20] sm:$0xff]   ;;  %s561_s15 = sshll.u32 %s307_s11, 4  ;;  %s548_s25 = scalar_lea.sflag [#allocation4], %s1268_s13  ;;  %s1296_s15 = int_to_ptr.vmem [resolvable:$true] %s561_s15 }
  0x70   : > { %730 = vmatprep.subr.bf16.mxu0 %v1050_v0  ;;  %750 = vmatprep.subr.bf16.mxu1 %v1050_v0  ;;  %v860_v12 = vld [vmem:[#allocation5 + $0x28] sm:$0xff]   ;;  %v861_v13 = vld [vmem:[#allocation5 + $0x30] sm:$0xff]   ;;  %v862_v14 = vld [vmem:[#allocation5 + $0x38] sm:$0xff]   ;;  %s957_s21 = scalar_lea.vmem %s1296_s15, 128  ;;  %p1363_p12 = scmp.ne.s32.totalorder %s1359_s8, 0 }
  0x71   : > { %v326_v15 = vld [vmem:[%s1272_s17] sm:$0xf]  ;;  %v869_v16 = vld [vmem:[#allocation7 + $0x30] sm:$0xff]   ;;  %p958_p8 = scmp.ne.s32.totalorder %s1296_s15, %s957_s21  ;;  %s1052_s16 = smov [#allocation8]  }
  0x72   : > { %v870_v17 = vld [vmem:[#allocation7 + $0x38] sm:$0xff]   ;;  %s961_s17 = sshll.u32 %s1052_s16, 4  ;;  %s962_s17 = int_to_ptr.vmem [resolvable:$false] %s961_s17 }
  0x73   : > { %751 = vmatpush3.bf16.msra.mxu1 %v864_v4  ;;  %v689_v18 = vld [vmem:[%s1345_s2] ss:$0 sm:$0xff]  ;;  %p959_p1 = pnand %p958_p8, %p1363_p12  ;;  %s963_s26 = scalar_lea.vmem %s962_s17, 256 }
  0x74   : > { %752 = vmatprep.subr.bf16.mxu1 %v1050_v0  ;;  %v688_v26 = vld [vmem:[%s1347_s4] ss:$0 sm:$0xff]  ;;  %p964_p3 = scmp.lt.s32.totalorder %s1296_s15, %s962_s17  ;;  %p965_p5 = scmp.lt.s32.totalorder %s963_s26, %s957_s21 }
  0x75   : > { %p960_p10 = pneg %p959_p1 }
  0x76   : > { %p966_p9 = por %p965_p5, %p964_p3 }
  0x77   : > { %731 = vmatpush3.bf16.xpose.msra.mxu0 %v856_v2  ;;  %753 = vmatpush3.bf16.msra.mxu1 %v865_v6 }
  0x78   : > { %732 = vmatprep.subr.bf16.mxu0 %v1050_v0  ;;  %754 = vmatprep.subr.bf16.mxu1 %v1050_v0  ;;  %p967_p11 = pnand %p966_p9, %p960_p10 }
  0x7b   : > { %755 = vmatpush3.bf16.msra.mxu1 %v866_v7 }
  0x7c   : > { %756 = vmatprep.subr.bf16.mxu1 %v1050_v0 }
  0x7f   : > { %733 = vmatpush3.bf16.xpose.msra.mxu0 %v857_v5  ;;  %757 = vmatpush3.bf16.msra.mxu1 %v867_v9 }
  0x80   : > { %734 = vmatprep.subr.bf16.mxu0 %v1050_v0  ;;  %758 = vmatprep.subr.bf16.mxu1 %v1050_v0 }
  0x83   : > { %759 = vmatpush3.bf16.msra.mxu1 %v868_v10 }
  0x84   : > { %760 = vmatprep.subr.bf16.mxu1 %v1050_v0 }
  0x87   : > { %735 = vmatpush3.bf16.xpose.msra.mxu0 %v858_v8  ;;  %761 = vmatpush3.bf16.msra.mxu1 %v869_v16 }
  0x88   : > { %736 = vmatprep.subr.bf16.mxu0 %v1050_v0  ;;  %762 = vmatprep.subr.bf16.mxu1 %v1050_v0 }
  0x8b   : > { %763 = vmatpush3.bf16.msra.mxu1 %v870_v17 }
  0x8f   : > { %737 = vmatpush3.bf16.xpose.msra.mxu0 %v859_v11 }
  0x90   : > { %738 = vmatprep.subr.bf16.mxu0 %v1050_v0 }
  0x97   : > { %739 = vmatpush3.bf16.xpose.msra.mxu0 %v860_v12 }
  0x98   : > { %740 = vmatprep.subr.bf16.mxu0 %v1050_v0 }
  0x9f   : > { %741 = vmatpush3.bf16.xpose.msra.mxu0 %v861_v13 }
  0xa0   : > { %742 = vmatprep.subr.bf16.mxu0 %v1050_v0 }
  0xa7   : > { %743 = vmatpush3.bf16.xpose.msra.mxu0 %v862_v14 }
  0xae   : > { %745 = vmatmul.mubr.bf16.vlgmr.msra.gmra.mrb[0].mxu0 %v326_v15 }
 0x181   : > { %v432_v19 = vpop.f32.mrb[0].mxu0 }
 0x182   : > { %v433_v20 = vadd.f32 %v689_v18, %v432_v19  ;;  %v746_v21 = vpop.f32.mrb[1].mxu0 }
 0x183   : > { %v435_v22 = vpop.f32.mrb[2].mxu0 }
 0x184   : > { %v438_v23 = vmax.f32 %v433_v20, 0.0  ;;  %v747_v24 = vpop.f32.mrb[3].mxu0 }
 0x186   : > { %v440_v25 = vpack.c.bf16 %v438_v23, %v438_v23 }
 0x188   : > { %765 = vmatmul.mubr.bf16.vlgmr.msra.gmra.mrb[0].mxu1 %v440_v25 }
 0x25b   : > { %v539_v27 = vpop.f32.mrb[0].mxu1 }
 0x25c   : > { %v545_v28 = vadd.f32 %v688_v26, %v539_v27  ;;  %v766_v29 = vpop.f32.mrb[1].mxu1 }
 0x25d   : > { %v542_v30 = vpop.f32.mrb[2].mxu1 }
 0x25e   : > { %546 = vst [vmem:[%s307_s11] sm:$0xff] %v545_v28  ;;  %v767_v31 = vpop.f32.mrb[3].mxu1 }
 0x25f   : > { %970 = shalt.err (!%p967_p11)
}
 0x260   : > { %s971_s13 = scalar_lea.hbm %s1294_s10, 128  ;;  %s975_s24 = scalar_lea.hbm %s1348_s5, 256 }
 0x261   : > { %p972_p0 = scmp.ne.s32.totalorder %s1294_s10, %s971_s13  ;;  %p976_p6 = scmp.lt.u32.totalorder %s1294_s10, %s1348_s5 }
 0x262   : > { %p977_p7 = scmp.lt.u32.totalorder %s975_s24, %s971_s13  ;;  %p979_p8 = scmp.lt.u32.totalorder %s971_s13, %s1294_s10 }
 0x263   : > { %p973_p4 = pnand %p972_p0, %p1363_p12 }
 0x264   : > { %p978_p2 = por %p977_p7, %p976_p6 }
 0x265   : > { %p974_p13 = pneg %p973_p4 }
 0x266   : > { %p980_p1 = por %p979_p8, %p978_p2 }
 0x268   : > { %p981_p10 = pnand %p980_p1, %p974_p13 }
 0x26a   : > { %984 = shalt.err (!%p981_p10)
}
 0x26b   : > { %778 = dma.vmem_to_hbm [thread:$0]  (%p1363_p12), %s1296_s15, 128, %s1294_s10, %s548_s25  }
 0x26c PF: > { %s573_s11 = sand.u32 1, %s1023_s18   ;;  %p1364_p3 = scmp.ne.s32.totalorder %s1356_s29, 0 }
 0x26d   : > { %p1365_p5 = scmp.ge.s32.totalorder %s1043_s23, 2  ;;  %s574_s27 = scalar_lea.sflag [#allocation4], %s573_s11 }
 0x26f   : > { %p792_p9 = pnand %p1365_p5, %p1364_p3 }
 0x271   : > { %1018 = dma.done.wait (!%p792_p9), %s574_s27, 128  }
 0x272   : > { %1020 = vsyncadd (!%p792_p9), %s574_s27, 4294967168  ;;  %s22_s23 = sadd.s32 1, %s1043_s23   ;;  %s1366_s18 = smov %s1027_s19 }
 0x273   : > { %p19_p11 = scmp.ge.s32.totalorder %s22_s23, 4   ;;  %s1367_s19 = smov %s1031_s20 }
 0x274   : > { %s1368_s20 = smov %s1225_s6  ;;  %s1369_s21 = smov %s1039_s22 }
 0x275   : > { %s1370_s22 = smov %s1372_s12  ;;  %21 = sbr.rel (!%p19_p11) target bundleno = 7 (0x7), region = 102 }
 0x27c   :  { %579 = vsyncpa [#allocation3], 1 }
 0x27d   :  { %581 = vsyncpa [#allocation3 + $0x1], 1 }
 0x27e   :  { %582 = vsyncpa [#allocation6], 1 }
 0x27f   :  { %583 = vsyncpa [#allocation4], 1 }
 0x280   :  { %585 = vsyncpa [#allocation4 + $0x1], 1 }

</bundles_post_ra>
